<compile_context>
chip_gen: v7x
topology: tpu7x:2x2x1
jax: 0.10.0
libtpu: 0.0.40
codegen_flags: <defaults>
</compile_context>

<pallas_src>
import functools

import jax
import jax.numpy as jnp
from jax.experimental import pallas as pl
from jax.experimental.pallas import tpu as pltpu


# ----------------------------- fused Pallas kernel ---------------------------

def _fused_resnet_head_kernel(x_ref, wk_ref, mask_ref, p_ref, out_ref, slab_ref,
                              *, H, W, Cout, Cin_p, B_blk):
    """Per batch-block: K-stacked 3x3 conv (ONE matmul) + ReLU -> avg/max pool -> fc head."""
    HW = H * W

    # Boolean wrap masks, derived once per grid step from the resident host-built 0/1 tile.
    keep_l = mask_ref[0:1, :] != 0.0        # keep x != 0     (dx == 0 taps wrap otherwise)
    keep_r = mask_ref[1:2, :] != 0.0        # keep x != W - 1 (dx == 2 taps wrap otherwise)

    # ---- Build the K-stacked slab: [9*Cin_p, B_blk*HW] ------------------------------------
    # Row block k = dy*3+dx holds the (dy,dx)-shifted channels; batch is folded into the lane
    # (N) axis so the conv weights stay MXU-stationary across the whole block.  Each shifted
    # read is paid exactly once per tap here (lane shift), masking is a VPU select.
    for b in range(B_blk):
        xb = x_ref[b]                                            # [Cin_p, L] bf16 (loaded once)
        for dy in range(3):
            for dx in range(3):
                k = dy * 3 + dx
                off = dy * W + dx                                # static lane offset into halo'd slab
                tap = xb[:, off:off + HW]                        # [Cin_p, HW]
                if dx == 0:
                    tap = jnp.where(keep_l, tap, 0)
                elif dx == 2:
                    tap = jnp.where(keep_r, tap, 0)
                slab_ref[k * Cin_p:(k + 1) * Cin_p, b * HW:(b + 1) * HW] = tap

    # ---- ONE MXU matmul: [Cout, 9*Cin_p] @ [9*Cin_p, B_blk*HW], f32 accumulation ----------
    acc = jnp.dot(wk_ref[...], slab_ref[...], preferred_element_type=jnp.float32)

    # Packed params: col0 conv bias, col1 fc1 weights, col2 fc2 weights, col3 head scalars.
    cb = p_ref[:, 0:1]                                           # [Cout, 1]
    w1 = p_ref[:, 1:2]                                           # [Cout, 1]
    w2 = p_ref[:, 2:3]                                           # [Cout, 1]
    b1 = p_ref[0:1, 3:4]                                         # fc1 bias          [1, 1]
    b2 = p_ref[1:2, 3:4]                                         # fc2 bias          [1, 1]
    wf = p_ref[2:3, 3:4]                                         # sigmoid(rho)      [1, 1]
    wc = p_ref[3:4, 3:4]                                         # 1 - sigmoid(rho)  [1, 1]

    conv = jnp.maximum(acc + cb, 0.0)                            # [Cout, B_blk*HW] bias + ReLU

    # ---- per-image global avg/max pool + fc1/fc2 head (VPU mul + XLU reductions) ----------
    inv_hw = 1.0 / HW
    o1_list, o2_list = [], []
    for b in range(B_blk):
        seg = conv[:, b * HW:(b + 1) * HW]                       # lane-aligned static slice
        avg = jnp.sum(seg, axis=1, keepdims=True) * inv_hw       # [Cout, 1]
        mx = jnp.max(seg, axis=1, keepdims=True)                 # [Cout, 1]
        o1_list.append(jnp.sum(avg * w1, axis=0, keepdims=True) + b1)   # [1, 1]
        o2_list.append(jnp.sum(mx * w2, axis=0, keepdims=True) + b2)    # [1, 1]
    o1 = jnp.concatenate(o1_list, axis=0)                        # [B_blk, 1]
    o2 = jnp.concatenate(o2_list, axis=0)                        # [B_blk, 1]
    fused = wf * o1 + wc * o2                                    # fusion == 4

    # Single merged store: one writeback per grid step instead of three scalar stores.
    out_ref[...] = jnp.concatenate([o1, o2, fused], axis=1)      # [B_blk, 3]


# ------------------------------ wrapper ---------------------------------------

def _pick_b_blk(B, Cout, HW):
    """Batch-block size: bounded by vreg budget for the f32 accumulator and by keeping
    >= 2 grid steps whenever B >= 2 (v7x megacore sharding of the 'parallel' axis)."""
    if B <= 1:
        return 1
    acc_cap = max(1, (32 * 4096) // (Cout * HW * 4))   # acc [Cout, B_blk*HW] f32 <= ~32 vregs
    mc_cap = max(1, B // 2)                            # keep >= 2 grid steps for v7x's 2 TCs
    return max(1, min(acc_cap, mc_cap, 8))


def resnet18_custom_forward(params, x, bsizes=None, *, b_blk=None):
    """Forward of Resnet18Custom with fusion=4, rings=(0,), arcs=(0,)."""
    # TODO(synk): fusion modes 0/1/2/3/5 and the rings/arcs != 0 path (branch2 consuming
    # {'features','bsizes'}) are alternate configurations and not implemented; bsizes is
    # accepted for signature fidelity but unused on this configuration.
    B, Cin, H, W = x.shape
    Cout = params["conv_w"].shape[0]
    assert Cout >= 4, "head scalars are packed into rows 0..3 of the param tile"
    HW = H * W
    Cin_p = ((Cin + 7) // 8) * 8              # pad channels to the sublane granule
    K = 9 * Cin_p                             # stacked contraction depth (one MXU matmul)
    L = HW + 2 * W + 2                        # flattened spatial + one zero row (+1 guard) each side

    if b_blk is None:
        b_blk = _pick_b_blk(B, Cout, HW)
    G = -(-B // b_blk)                        # grid length (>= 2 whenever B >= 2)
    B_pad = G * b_blk

    # Channel-major flattened input with height halo (pure pad of NCHW, 1x HBM traffic). bf16 for MXU.
    x_flat = jnp.pad(x.reshape(B, Cin, HW),
                     ((0, B_pad - B), (0, Cin_p - Cin), (W + 1, W + 1))).astype(jnp.bfloat16)

    # Conv weights as ONE [Cout, 9*Cin_p] tile; K index = (dy*3 + dx)*Cin_p + ci (matches the slab).
    wk = jnp.pad(params["conv_w"], ((0, 0), (0, Cin_p - Cin), (0, 0), (0, 0)))
    wk = wk.transpose(0, 2, 3, 1).reshape(Cout, K).astype(jnp.bfloat16)

    # Horizontal-wrap keep-masks, precomputed once (row 0: dx==0 taps, row 1: dx==2 taps).
    col = jnp.arange(HW, dtype=jnp.int32) % W
    masks = jnp.stack([(col != 0), (col != W - 1)]).astype(jnp.float32)          # [2, HW]

    # One packed param tile: [conv_b | fc1_w | fc2_w | head scalars] with sigmoid(rho) precomputed.
    wsig = jax.nn.sigmoid(params["rho"].astype(jnp.float32)).reshape(())
    head = jnp.zeros((Cout,), jnp.float32)
    head = head.at[0].set(params["fc1_b"].reshape(()).astype(jnp.float32))
    head = head.at[1].set(params["fc2_b"].reshape(()).astype(jnp.float32))
    head = head.at[2].set(wsig)
    head = head.at[3].set(1.0 - wsig)
    ptile = jnp.stack([params["conv_b"].astype(jnp.float32),
                       params["fc1_w"].reshape(Cout).astype(jnp.float32),
                       params["fc2_w"].reshape(Cout).astype(jnp.float32),
                       head], axis=1)                                            # [Cout, 4]

    kernel = functools.partial(_fused_resnet_head_kernel,
                               H=H, W=W, Cout=Cout, Cin_p=Cin_p, B_blk=b_blk)
    out = pl.pallas_call(
        kernel,
        out_shape=jax.ShapeDtypeStruct((G, b_blk, 3), jnp.float32),
        grid=(G,),
        in_specs=[
            pl.BlockSpec((b_blk, Cin_p, L), lambda i: (i, 0, 0)),   # per-block input slab
            pl.BlockSpec((Cout, K), lambda i: (0, 0)),              # stacked conv weights (resident)
            pl.BlockSpec((2, HW), lambda i: (0, 0)),                # wrap masks (resident)
            pl.BlockSpec((Cout, 4), lambda i: (0, 0)),              # packed params (resident)
        ],
        out_specs=pl.BlockSpec((None, b_blk, 3), lambda i: (i, 0, 0)),
        scratch_shapes=[pltpu.VMEM((K, b_blk * HW), jnp.bfloat16)],  # K-stacked slab
        compiler_params=pltpu.CompilerParams(
            dimension_semantics=("parallel",),      # batch-block axis -> both TCs on v7x
            # VMEM need: 2*(b_blk*Cin_p*L*2B) input double-buffer + K*b_blk*HW*2B slab + small
            # resident tiles -> well under 1 MiB at these shapes; 32 MiB stays inside the v7x
            # scoped budget (64 MiB physical) and the v5e/v6e defaults.
            vmem_limit_bytes=32 * 1024 * 1024,
        ),
    )(x_flat, wk, masks, ptile)

    out = out.reshape(B_pad, 3)[:B]
    return out[:, 0], out[:, 1], out[:, 2]


# ----------------------------- reference & main -------------------------------

def _reference(params, x):
    feats = jax.lax.conv_general_dilated(
        x, params["conv_w"], window_strides=(1, 1), padding="SAME",
        dimension_numbers=("NCHW", "OIHW", "NCHW"))
    feats = jnp.maximum(feats + params["conv_b"][None, :, None, None], 0.0)
    avg = feats.mean(axis=(2, 3))
    mx = feats.max(axis=(2, 3))
    o1 = avg @ params["fc1_w"].T + params["fc1_b"]
    o2 = mx @ params["fc2_w"].T + params["fc2_b"]
    w = jax.nn.sigmoid(params["rho"])
    out = w * o1 + (1.0 - w) * o2
    return o1[:, 0], o2[:, 0], out[:, 0]


if __name__ == "__main__":
    key = jax.random.PRNGKey(0)
    B, Cin, H, W = 2, 4, 16, 16
    Cf = 32
    ks = jax.random.split(key, 6)

    params = {
        "conv_w": 0.1 * jax.random.normal(ks[0], (Cf, Cin, 3, 3), jnp.float32),
        "conv_b": 0.1 * jax.random.normal(ks[1], (Cf,), jnp.float32),
        "fc1_w": 0.1 * jax.random.normal(ks[2], (1, Cf), jnp.float32),
        "fc1_b": jnp.zeros((1,), jnp.float32),
        "fc2_w": 0.1 * jax.random.normal(ks[3], (1, Cf), jnp.float32),
        "fc2_b": jnp.zeros((1,), jnp.float32),
        "rho": jnp.array(0.3, jnp.float32),
    }
    x = jax.random.normal(ks[4], (B, Cin, H, W), jnp.float32)
    bsizes = jnp.ones((B,), jnp.float32)

    out1, out2, out = jax.jit(resnet18_custom_forward)(params, x, bsizes)
    jax.block_until_ready((out1, out2, out))

    r1, r2, r = _reference(params, x)
    assert out1.shape == (B,) and out2.shape == (B,) and out.shape == (B,)
    # bf16 matmul inputs (f32 accumulation) -> slightly looser tolerance than pure-f32.
    assert jnp.allclose(out1, r1, atol=2e-2, rtol=2e-2)
    assert jnp.allclose(out2, r2, atol=2e-2, rtol=2e-2)
    assert jnp.allclose(out, r, atol=2e-2, rtol=2e-2)

    print("KERNEL_OK")
</pallas_src>

<mosaic_0001>
module attributes {stable_mosaic.version = 11 : i64} {
  func.func @_fused_resnet_head_kernel(%arg0: i32, %arg1: memref<1x8x290xbf16, #tpu.memory_space<vmem>>, %arg2: memref<32x72xbf16, #tpu.memory_space<vmem>>, %arg3: memref<2x256xf32, #tpu.memory_space<vmem>>, %arg4: memref<32x4xf32, #tpu.memory_space<vmem>>, %arg5: memref<1x1x3xf32, #tpu.memory_space<vmem>>, %arg6: memref<72x256xbf16, #tpu.memory_space<vmem>>) attributes {dimension_semantics = [#tpu.dimension_semantics<parallel>], iteration_bounds = array<i64: 2>, scalar_prefetch = 0 : i64, scratch_operands = 1 : i64, tpu.core_type = #tpu.core_type<tc>, window_params = [{transform_indices = @transform_0, window_bounds = array<i64: 1, 8, 290>}, {pipeline_mode = #tpu.pipeline_mode<synchronous>, transform_indices = @transform_1, window_bounds = array<i64: 32, 72>}, {pipeline_mode = #tpu.pipeline_mode<synchronous>, transform_indices = @transform_2, window_bounds = array<i64: 2, 256>}, {pipeline_mode = #tpu.pipeline_mode<synchronous>, transform_indices = @transform_3, window_bounds = array<i64: 32, 4>}, {transform_indices = @transform_4, window_bounds = array<i64: 1, 1, 3>}]} {
    %c0 = arith.constant 0 : index
    %c0_0 = arith.constant 0 : index
    %0 = vector.load %arg3[%c0, %c0_0] : memref<2x256xf32, #tpu.memory_space<vmem>>, vector<1x256xf32>
    %cst = arith.constant 0.000000e+00 : f32
    %1 = vector.broadcast %cst : f32 to vector<1x256xf32>
    %2 = arith.cmpf one, %0, %1 : vector<1x256xf32>
    %c1 = arith.constant 1 : index
    %c0_1 = arith.constant 0 : index
    %3 = vector.load %arg3[%c1, %c0_1] : memref<2x256xf32, #tpu.memory_space<vmem>>, vector<1x256xf32>
    %cst_2 = arith.constant 0.000000e+00 : f32
    %4 = vector.broadcast %cst_2 : f32 to vector<1x256xf32>
    %5 = arith.cmpf one, %3, %4 : vector<1x256xf32>
    %c0_3 = arith.constant 0 : index
    %c0_4 = arith.constant 0 : index
    %c0_5 = arith.constant 0 : index
    %6 = vector.load %arg1[%c0_3, %c0_4, %c0_5] : memref<1x8x290xbf16, #tpu.memory_space<vmem>>, vector<1x8x290xbf16>
    %7 = vector.shape_cast %6 : vector<1x8x290xbf16> to vector<8x290xbf16>
    %8 = vector.extract_strided_slice %7 {offsets = [0, 0], sizes = [8, 256], strides = [1, 1]} : vector<8x290xbf16> to vector<8x256xbf16>
    %c0_i32 = arith.constant 0 : i32
    %9 = arith.sitofp %c0_i32 : i32 to bf16
    %10 = vector.shape_cast %2 : vector<1x256xi1> to vector<1x256xi1>
    %11 = vector.broadcast %10 : vector<1x256xi1> to vector<8x256xi1>
    %12 = vector.broadcast %9 : bf16 to vector<8x256xbf16>
    %13 = arith.select %11, %8, %12 : vector<8x256xi1>, vector<8x256xbf16>
    %c0_6 = arith.constant 0 : index
    %c0_7 = arith.constant 0 : index
    %14 = vector.load %arg6[%c0_6, %c0_7] : memref<72x256xbf16, #tpu.memory_space<vmem>>, vector<8x256xbf16>
    tpu.vector_store %arg6[%c0_6, %c0_7], %13 {strides = array<i32>} : memref<72x256xbf16, #tpu.memory_space<vmem>>, vector<8x256xbf16>,
    %15 = vector.extract_strided_slice %7 {offsets = [0, 1], sizes = [8, 256], strides = [1, 1]} : vector<8x290xbf16> to vector<8x256xbf16>
    %c8 = arith.constant 8 : index
    %c0_8 = arith.constant 0 : index
    %16 = vector.load %arg6[%c8, %c0_8] : memref<72x256xbf16, #tpu.memory_space<vmem>>, vector<8x256xbf16>
    tpu.vector_store %arg6[%c8, %c0_8], %15 {strides = array<i32>} : memref<72x256xbf16, #tpu.memory_space<vmem>>, vector<8x256xbf16>,
    %17 = vector.extract_strided_slice %7 {offsets = [0, 2], sizes = [8, 256], strides = [1, 1]} : vector<8x290xbf16> to vector<8x256xbf16>
    %c0_i32_9 = arith.constant 0 : i32
    %18 = arith.sitofp %c0_i32_9 : i32 to bf16
    %19 = vector.shape_cast %5 : vector<1x256xi1> to vector<1x256xi1>
    %20 = vector.broadcast %19 : vector<1x256xi1> to vector<8x256xi1>
    %21 = vector.broadcast %18 : bf16 to vector<8x256xbf16>
    %22 = arith.select %20, %17, %21 : vector<8x256xi1>, vector<8x256xbf16>
    %c16 = arith.constant 16 : index
    %c0_10 = arith.constant 0 : index
    %23 = vector.load %arg6[%c16, %c0_10] : memref<72x256xbf16, #tpu.memory_space<vmem>>, vector<8x256xbf16>
    tpu.vector_store %arg6[%c16, %c0_10], %22 {strides = array<i32>} : memref<72x256xbf16, #tpu.memory_space<vmem>>, vector<8x256xbf16>,
    %24 = vector.extract_strided_slice %7 {offsets = [0, 16], sizes = [8, 256], strides = [1, 1]} : vector<8x290xbf16> to vector<8x256xbf16>
    %c0_i32_11 = arith.constant 0 : i32
    %25 = arith.sitofp %c0_i32_11 : i32 to bf16
    %26 = vector.shape_cast %2 : vector<1x256xi1> to vector<1x256xi1>
    %27 = vector.broadcast %26 : vector<1x256xi1> to vector<8x256xi1>
    %28 = vector.broadcast %25 : bf16 to vector<8x256xbf16>
    %29 = arith.select %27, %24, %28 : vector<8x256xi1>, vector<8x256xbf16>
    %c24 = arith.constant 24 : index
    %c0_12 = arith.constant 0 : index
    %30 = vector.load %arg6[%c24, %c0_12] : memref<72x256xbf16, #tpu.memory_space<vmem>>, vector<8x256xbf16>
    tpu.vector_store %arg6[%c24, %c0_12], %29 {strides = array<i32>} : memref<72x256xbf16, #tpu.memory_space<vmem>>, vector<8x256xbf16>,
    %31 = vector.extract_strided_slice %7 {offsets = [0, 17], sizes = [8, 256], strides = [1, 1]} : vector<8x290xbf16> to vector<8x256xbf16>
    %c32 = arith.constant 32 : index
    %c0_13 = arith.constant 0 : index
    %32 = vector.load %arg6[%c32, %c0_13] : memref<72x256xbf16, #tpu.memory_space<vmem>>, vector<8x256xbf16>
    tpu.vector_store %arg6[%c32, %c0_13], %31 {strides = array<i32>} : memref<72x256xbf16, #tpu.memory_space<vmem>>, vector<8x256xbf16>,
    %33 = vector.extract_strided_slice %7 {offsets = [0, 18], sizes = [8, 256], strides = [1, 1]} : vector<8x290xbf16> to vector<8x256xbf16>
    %c0_i32_14 = arith.constant 0 : i32
    %34 = arith.sitofp %c0_i32_14 : i32 to bf16
    %35 = vector.shape_cast %5 : vector<1x256xi1> to vector<1x256xi1>
    %36 = vector.broadcast %35 : vector<1x256xi1> to vector<8x256xi1>
    %37 = vector.broadcast %34 : bf16 to vector<8x256xbf16>
    %38 = arith.select %36, %33, %37 : vector<8x256xi1>, vector<8x256xbf16>
    %c40 = arith.constant 40 : index
    %c0_15 = arith.constant 0 : index
    %39 = vector.load %arg6[%c40, %c0_15] : memref<72x256xbf16, #tpu.memory_space<vmem>>, vector<8x256xbf16>
    tpu.vector_store %arg6[%c40, %c0_15], %38 {strides = array<i32>} : memref<72x256xbf16, #tpu.memory_space<vmem>>, vector<8x256xbf16>,
    %40 = vector.extract_strided_slice %7 {offsets = [0, 32], sizes = [8, 256], strides = [1, 1]} : vector<8x290xbf16> to vector<8x256xbf16>
    %c0_i32_16 = arith.constant 0 : i32
    %41 = arith.sitofp %c0_i32_16 : i32 to bf16
    %42 = vector.shape_cast %2 : vector<1x256xi1> to vector<1x256xi1>
    %43 = vector.broadcast %42 : vector<1x256xi1> to vector<8x256xi1>
    %44 = vector.broadcast %41 : bf16 to vector<8x256xbf16>
    %45 = arith.select %43, %40, %44 : vector<8x256xi1>, vector<8x256xbf16>
    %c48 = arith.constant 48 : index
    %c0_17 = arith.constant 0 : index
    %46 = vector.load %arg6[%c48, %c0_17] : memref<72x256xbf16, #tpu.memory_space<vmem>>, vector<8x256xbf16>
    tpu.vector_store %arg6[%c48, %c0_17], %45 {strides = array<i32>} : memref<72x256xbf16, #tpu.memory_space<vmem>>, vector<8x256xbf16>,
    %47 = vector.extract_strided_slice %7 {offsets = [0, 33], sizes = [8, 256], strides = [1, 1]} : vector<8x290xbf16> to vector<8x256xbf16>
    %c56 = arith.constant 56 : index
    %c0_18 = arith.constant 0 : index
    %48 = vector.load %arg6[%c56, %c0_18] : memref<72x256xbf16, #tpu.memory_space<vmem>>, vector<8x256xbf16>
    tpu.vector_store %arg6[%c56, %c0_18], %47 {strides = array<i32>} : memref<72x256xbf16, #tpu.memory_space<vmem>>, vector<8x256xbf16>,
    %49 = vector.extract_strided_slice %7 {offsets = [0, 34], sizes = [8, 256], strides = [1, 1]} : vector<8x290xbf16> to vector<8x256xbf16>
    %c0_i32_19 = arith.constant 0 : i32
    %50 = arith.sitofp %c0_i32_19 : i32 to bf16
    %51 = vector.shape_cast %5 : vector<1x256xi1> to vector<1x256xi1>
    %52 = vector.broadcast %51 : vector<1x256xi1> to vector<8x256xi1>
    %53 = vector.broadcast %50 : bf16 to vector<8x256xbf16>
    %54 = arith.select %52, %49, %53 : vector<8x256xi1>, vector<8x256xbf16>
    %c64 = arith.constant 64 : index
    %c0_20 = arith.constant 0 : index
    %55 = vector.load %arg6[%c64, %c0_20] : memref<72x256xbf16, #tpu.memory_space<vmem>>, vector<8x256xbf16>
    tpu.vector_store %arg6[%c64, %c0_20], %54 {strides = array<i32>} : memref<72x256xbf16, #tpu.memory_space<vmem>>, vector<8x256xbf16>,
    %c0_21 = arith.constant 0 : index
    %c0_22 = arith.constant 0 : index
    %56 = vector.load %arg2[%c0_21, %c0_22] : memref<32x72xbf16, #tpu.memory_space<vmem>>, vector<32x72xbf16>
    %c0_23 = arith.constant 0 : index
    %c0_24 = arith.constant 0 : index
    %57 = vector.load %arg6[%c0_23, %c0_24] : memref<72x256xbf16, #tpu.memory_space<vmem>>, vector<72x256xbf16>
    %cst_25 = arith.constant dense<0.000000e+00> : vector<32x256xf32>
    %58 = tpu.matmul %56, %57, %cst_25 {dimension_numbers = #tpu.dot_dimension_numbers<[1], [0], [0], [1], [0, 0, 1, 1], [], []>} : vector<32x72xbf16>, vector<72x256xbf16>, vector<32x256xf32> -> vector<32x256xf32>
    %c0_26 = arith.constant 0 : index
    %c0_27 = arith.constant 0 : index
    %59 = vector.load %arg4[%c0_26, %c0_27] : memref<32x4xf32, #tpu.memory_space<vmem>>, vector<32x1xf32>
    %c0_28 = arith.constant 0 : index
    %c1_29 = arith.constant 1 : index
    %60 = vector.load %arg4[%c0_28, %c1_29] : memref<32x4xf32, #tpu.memory_space<vmem>>, vector<32x1xf32>
    %c0_30 = arith.constant 0 : index
    %c2 = arith.constant 2 : index
    %61 = vector.load %arg4[%c0_30, %c2] : memref<32x4xf32, #tpu.memory_space<vmem>>, vector<32x1xf32>
    %c0_31 = arith.constant 0 : index
    %c3 = arith.constant 3 : index
    %62 = vector.load %arg4[%c0_31, %c3] : memref<32x4xf32, #tpu.memory_space<vmem>>, vector<1x1xf32>
    %c1_32 = arith.constant 1 : index
    %c3_33 = arith.constant 3 : index
    %63 = vector.load %arg4[%c1_32, %c3_33] : memref<32x4xf32, #tpu.memory_space<vmem>>, vector<1x1xf32>
    %c2_34 = arith.constant 2 : index
    %c3_35 = arith.constant 3 : index
    %64 = vector.load %arg4[%c2_34, %c3_35] : memref<32x4xf32, #tpu.memory_space<vmem>>, vector<1x1xf32>
    %c3_36 = arith.constant 3 : index
    %c3_37 = arith.constant 3 : index
    %65 = vector.load %arg4[%c3_36, %c3_37] : memref<32x4xf32, #tpu.memory_space<vmem>>, vector<1x1xf32>
    %66 = vector.broadcast %59 : vector<32x1xf32> to vector<32x256xf32>
    %67 = arith.addf %58, %66 : vector<32x256xf32>
    %cst_38 = arith.constant 0.000000e+00 : f32
    %68 = vector.broadcast %cst_38 : f32 to vector<32x256xf32>
    %69 = arith.maximumf %67, %68 : vector<32x256xf32>
    %cst_39 = arith.constant dense<0.000000e+00> : vector<32xf32>
    %70 = vector.multi_reduction <add>, %69, %cst_39 [1] : vector<32x256xf32> to vector<32xf32>
    %71 = vector.shape_cast %70 : vector<32xf32> to vector<32x1xf32>
    %cst_40 = arith.constant 3.906250e-03 : f32
    %72 = vector.broadcast %cst_40 : f32 to vector<32x1xf32>
    %73 = arith.mulf %71, %72 : vector<32x1xf32>
    %cst_41 = arith.constant dense<0xFF800000> : vector<32xf32>
    %74 = vector.multi_reduction <maximumf>, %69, %cst_41 [1] : vector<32x256xf32> to vector<32xf32>
    %75 = vector.shape_cast %74 : vector<32xf32> to vector<32x1xf32>
    %76 = arith.mulf %73, %60 : vector<32x1xf32>
    %cst_42 = arith.constant dense<0.000000e+00> : vector<1xf32>
    %77 = vector.multi_reduction <add>, %76, %cst_42 [0] : vector<32x1xf32> to vector<1xf32>
    %78 = vector.shape_cast %77 : vector<1xf32> to vector<1x1xf32>
    %79 = arith.addf %78, %62 : vector<1x1xf32>
    %80 = arith.mulf %75, %61 : vector<32x1xf32>
    %cst_43 = arith.constant dense<0.000000e+00> : vector<1xf32>
    %81 = vector.multi_reduction <add>, %80, %cst_43 [0] : vector<32x1xf32> to vector<1xf32>
    %82 = vector.shape_cast %81 : vector<1xf32> to vector<1x1xf32>
    %83 = arith.addf %82, %63 : vector<1x1xf32>
    %84 = arith.mulf %64, %79 : vector<1x1xf32>
    %85 = arith.mulf %65, %83 : vector<1x1xf32>
    %86 = arith.addf %84, %85 : vector<1x1xf32>
    %87 = tpu.concatenate %79, %83, %86 in 1 : vector<1x1xf32>, vector<1x1xf32>, vector<1x1xf32> -> vector<1x3xf32>
    %c0_44 = arith.constant 0 : index
    %c0_45 = arith.constant 0 : index
    %c0_46 = arith.constant 0 : index
    %88 = vector.load %arg5[%c0_44, %c0_45, %c0_46] : memref<1x1x3xf32, #tpu.memory_space<vmem>>, vector<1x1x3xf32>
    %89 = vector.shape_cast %88 : vector<1x1x3xf32> to vector<1x3xf32>
    %90 = vector.shape_cast %87 : vector<1x3xf32> to vector<1x1x3xf32>
    tpu.vector_store %arg5[%c0_44, %c0_45, %c0_46], %90 {strides = array<i32>} : memref<1x1x3xf32, #tpu.memory_space<vmem>>, vector<1x1x3xf32>,
    return
  }
  func.func @transform_0(%arg0: i32) -> (i32, i32, i32) {
    %c0_i32 = arith.constant 0 : i32
    %c0_i32_0 = arith.constant 0 : i32
    %c0_i32_1 = arith.constant 0 : i32
    return %arg0, %c0_i32, %c0_i32_0 : i32, i32, i32
  }
  func.func @transform_1(%arg0: i32) -> (i32, i32) {
    %c0_i32 = arith.constant 0 : i32
    %c0_i32_0 = arith.constant 0 : i32
    %c0_i32_1 = arith.constant 0 : i32
    return %c0_i32, %c0_i32_0 : i32, i32
  }
  func.func @transform_2(%arg0: i32) -> (i32, i32) {
    %c0_i32 = arith.constant 0 : i32
    %c0_i32_0 = arith.constant 0 : i32
    %c0_i32_1 = arith.constant 0 : i32
    return %c0_i32, %c0_i32_0 : i32, i32
  }
  func.func @transform_3(%arg0: i32) -> (i32, i32) {
    %c0_i32 = arith.constant 0 : i32
    %c0_i32_0 = arith.constant 0 : i32
    %c0_i32_1 = arith.constant 0 : i32
    return %c0_i32, %c0_i32_0 : i32, i32
  }
  func.func @transform_4(%arg0: i32) -> (i32, i32, i32) {
    %c0_i32 = arith.constant 0 : i32
    %c0_i32_0 = arith.constant 0 : i32
    %c0_i32_1 = arith.constant 0 : i32
    return %arg0, %c0_i32, %c0_i32_0 : i32, i32, i32
  }
}

</mosaic_0001>

<bundles_post_ra>
// kernel: resnet18_custom_forward.1
= control target key start
LH: loop header
LB: loop body
LE: loop exit
PB: predicated region body
PF: predicated region fallthrough
CT: control target
= control target key end

     0   :  { %s807_s15 = smov 0   ;;  %s966_s0 = inlined_call_operand.vmem [shape: bf16[2,8,290], index: 0, kind: input, shape index: {}]   ;;  %s967_s1 = inlined_call_operand.vmem [shape: bf16[32,72], index: 1, kind: input, shape index: {}]   ;;  %s968_s2 = inlined_call_operand.vmem [shape: f32[2,256], index: 2, kind: input, shape index: {}]   ;;  %s969_s3 = inlined_call_operand.vmem [shape: f32[32,4], index: 3, kind: input, shape index: {}]   ;;  %s970_s4 = inlined_call_operand.vmem [shape: f32[2,1,3], index: 4, kind: output, shape index: {}]  }
   0x1 LB: > { %s697_s16 = sadd.s32 4294967295, %s765_s15   ;;  %p701_p0 = scmp.ge.s32.totalorder %s765_s15, 1  ;;  %s765_s15 = sphi %s807_s15, %s14_s15  }
   0x2   : > { %p162_p1 = scmp.lt.s32.totalorder %s765_s15, 3 }
   0x4   : > { %p163_p2 = pnand %p701_p0, %p162_p1 }
   0x5   : > { %v703_v0 = vld [vmem:[%s968_s2 + $0x1] ss:$2 sm:$0x3] (!%p163_p2)  ;;  %v205_v1 = vlaneseq (!%p163_p2)  ;;  %v197_v2 = vld [vmem:[%s968_s2] ss:$2 sm:$0x3] (!%p163_p2) }
   0x6   : > { %166 = sbr.rel (%p163_p2) target bundleno = 911 (0x38f), region = 36  ;;  %vm201_vm0 = vcmp.ne.f32.partialorder (!%p163_p2), %v703_v0, 0.0  ;;  %v767_v3 = vmov (!%p163_p2), 0   ;;  %vm198_vm1 = vcmp.ne.f32.partialorder (!%p163_p2), %v197_v2, 0.0  ;;  %p186_p3 = scmp.lt.s32.totalorder (!%p163_p2), %s697_s16, 1  ;;  %vm248_vm8 = vcmask (!%p163_p2), 15360  }
   0x7   : > { %520 = vmatprep.mubr.bf16.mxu0 (!%p163_p2), %v767_v3  ;;  %530 = vmatprep.mubr.bf16.mxu1 (!%p163_p2), %v767_v3  ;;  %v206_v4 = vshrl.u32 (!%p163_p2), %v205_v1, 7  ;;  %v232_v5 = vsel (!%p163_p2), %vm201_vm0, 1, %v767_v3  ;;  %v204_v6 = vsel (!%p163_p2), %vm198_vm1, 1, %v767_v3  ;;  %s768_s22 = smov (!%p163_p2), 2   ;;  %s769_s23 = smov (!%p163_p2), 18   ;;  %vm304_vm10 = vcmask (!%p163_p2), 146432  }
   0x8   : > { %755 = vset.pattern.permute.xlu1 (!%p163_p2), %v767_v3  ;;  %756 = vset.pattern.permute.xlu0 (!%p163_p2), %v767_v3  ;;  %s770_s27 = smov (!%p163_p2), 16   ;;  %s771_s28 = smov (!%p163_p2), 32   ;;  %vm271_vm12 = vcmask (!%p163_p2), 130048   ;;  %vm326_vm0 = vcmask (!%p163_p2), 261120   ;;  %v884_v55 = vld [vmem:[%s969_s3 + $0x8] sm:$0xff] (!%p163_p2)  ;;  %v889_v56 = vld [vmem:[%s969_s3] sm:$0xff] (!%p163_p2) }
   0x9   : > { %v207_v7 = vsub.s32 (!%p163_p2), 0, %v206_v4  ;;  %v211_v8 = vsub.s32 (!%p163_p2), 1, %v206_v4  ;;  %s772_s29 = smov (!%p163_p2), 34   ;;  %s773_s30 = smov (!%p163_p2), 127   ;;  %v896_v57 = vld [vmem:[%s969_s3 + $0x10] sm:$0xff] (!%p163_p2)  ;;  %v902_v58 = vld [vmem:[%s969_s3 + $0x18] sm:$0xff] (!%p163_p2) }
   0xa   : > { %s774_s5 = smov (!%p163_p2), 111   ;;  %s775_s6 = smov (!%p163_p2), 95   ;;  %v758_v47 = vld [vmem:[%s967_s1 + $0x8] sm:$0xff] (!%p163_p2)  }
   0xb   : > { %v236_v9 = vrot.slane (!%p163_p2), %v232_v5, %v207_v7  ;;  %v240_v10 = vrot.slane (!%p163_p2), %v232_v5, %v211_v8  ;;  %v208_v11 = vrot.slane (!%p163_p2), %v204_v6, %v207_v7  ;;  %v212_v12 = vrot.slane (!%p163_p2), %v204_v6, %v211_v8  ;;  %s776_s7 = smov (!%p163_p2), 126   ;;  %s777_s8 = smov (!%p163_p2), 112  }
   0xc   : > { %s778_s9 = smov (!%p163_p2), 110   ;;  %s779_s10 = smov (!%p163_p2), 96  }
   0xd   : > { %s980_s16 = smov (!%p186_p3, %s697_s16), 1  ;;  %vm241_vm2 = vcmp.eq.s32.totalorder %v236_v9, 1  ;;  %vm242_vm3 = vcmp.eq.s32.totalorder %v240_v10, 1  ;;  %vm213_vm4 = vcmp.eq.s32.totalorder %v208_v11, 1  ;;  %vm214_vm5 = vcmp.eq.s32.totalorder %v212_v12, 1  ;;  %s780_s11 = smov 94  }
   0xe   : > { %vm243_vm6 = vmpackc.low %vm242_vm3, %vm241_vm2  ;;  %s731_s21 = smul.u32 12, %s980_s16  ;;  %vm359_vm3 = vcmask 277504   ;;  %s193_s12 = scalar_lea.vmem %s970_s4, %s980_s16 }
   0xf   : > { %v244_v13 = vsel %vm243_vm6, 65537, %v767_v3  ;;  %vm824_vm7 = vmpackc.low %vm214_vm5, %vm213_vm4  ;;  %vm226_vm4 = vcmask 1043456   ;;  %vm228_vm5 = vcmask 1039360  }
  0x10   : > { %245 = vrot.lane.b32.xlu0 %v244_v13, %s768_s22  ;;  %301 = vrot.lane.b32.xlu1 %v244_v13, %s769_s23  ;;  %v267_v15 = vsel %vm824_vm7, 65537, %v767_v3  ;;  %s190_s26 = scalar_lea.vmem %s966_s0, %s731_s21 }
  0x11   : > { %v834_v16 = vld [vmem:[%s190_s26] sm:$0xff]  ;;  %v838_v17 = vld [vmem:[%s190_s26 + $0x8] sm:$0xf] }
  0x12   : > { %v216_v45 = vsel %vm824_vm7, %v834_v16, 0  ;;  %vm263_vm7 = vcmask 1031168  }
  0x14   : > { %268 = vrot.lane.b32.xlu0 %v267_v15, %s770_s27  ;;  %323 = vrot.lane.b32.xlu1 %v267_v15, %s771_s28 }
  0x18   : > { %356 = vrot.lane.b32.xlu0 %v244_v13, %s772_s29  ;;  %220 = vrot.lane.b32.xlu1 %v834_v16, %s773_s30 }
  0x1c   : > { %222 = vrot.lane.b32.xlu0 %v838_v17, %s773_s30  ;;  %290 = vrot.lane.b32.xlu1 %v834_v16, %s774_s5 }
  0x20   : > { %292 = vrot.lane.b32.xlu0 %v838_v17, %s774_s5  ;;  %345 = vrot.lane.b32.xlu1 %v834_v16, %s775_s6 }
  0x24   : > { %347 = vrot.lane.b32.xlu0 %v838_v17, %s775_s6  ;;  %s781_s6 = smov 1  }
  0x82   : > { %v246_v18 = vpop.permute.xlu0 %245  ;;  %v302_v19 = vpop.permute.xlu1 %301 }
  0x83   : > { %v247_v20 = vrot.slane %v246_v18, 4  ;;  %v303_v21 = vrot.slane %v302_v19, 4 }
  0x85   : > { %v249_v22 = vsel %vm248_vm8, %v247_v20, %v246_v18  ;;  %vm251_vm9 = vcmp.ne.s16.totalorder %v247_v20, 0  ;;  %v305_v28 = vsel %vm304_vm10, %v303_v21, %v302_v19  ;;  %vm851_vm14 = vcmp.ne.s16.totalorder %v303_v21, 0 }
  0x86   : > { %vm250_vm11 = vcmp.ne.s16.totalorder %v249_v22, 0  ;;  %v269_v23 = vpop.permute.xlu0 %268  ;;  %v253_v24 = vsel %vm251_vm9, %v838_v17, 0  ;;  %v324_v25 = vpop.permute.xlu1 %323  ;;  %vm306_vm1 = vcmp.ne.s16.totalorder %v305_v28, 0  ;;  %v309_v36 = vsel %vm851_vm14, %v838_v17, 0 }
  0x87   : > { %v270_v26 = vrot.slane %v269_v23, 4  ;;  %258 = vrot.lane.b32.xlu0 %v253_v24, %s776_s7  ;;  %v252_v27 = vsel %vm250_vm11, %v834_v16, 0  ;;  %v325_v30 = vrot.slane %v324_v25, 4  ;;  %v308_v42 = vsel %vm306_vm1, %v834_v16, 0 }
  0x88   : > { %256 = vrot.lane.b32.xlu1 %v252_v27, %s776_s7  ;;  %vm286_vm11 = vcmask 916480   ;;  %vm352_vm14 = vcmask 777216   ;;  %vm474_vm1 = vcmask 588800  }
  0x89   : > { %v272_v29 = vsel %vm271_vm12, %v270_v26, %v269_v23  ;;  %vm274_vm13 = vcmp.ne.s16.totalorder %v270_v26, 0  ;;  %v327_v37 = vsel %vm326_vm0, %v325_v30, %v324_v25  ;;  %vm860_vm2 = vcmp.ne.s16.totalorder %v325_v30, 0 }
  0x8a   : > { %vm273_vm15 = vcmp.ne.s16.totalorder %v272_v29, 0  ;;  %v276_v32 = vsel %vm274_vm13, %v838_v17, 0  ;;  %v357_v33 = vpop.permute.xlu0 %356  ;;  %v221_v34 = vpop.permute.xlu1 %220  ;;  %vm328_vm6 = vcmp.ne.s16.totalorder %v327_v37, 0  ;;  %v331_v44 = vsel %vm860_vm2, %v838_v17, 0 }
  0x8b   : > { %281 = vrot.lane.b32.xlu0 %v276_v32, %s777_s8  ;;  %v275_v35 = vsel %vm273_vm15, %v834_v16, 0  ;;  %v358_v38 = vrot.slane %v357_v33, 4  ;;  %v224_v40 = vrot.slane %v221_v34, 4  ;;  %v330_v50 = vsel %vm328_vm6, %v834_v16, 0 }
  0x8c   : > { %279 = vrot.lane.b32.xlu1 %v275_v35, %s777_s8  ;;  %vm297_vm12 = vcmask 908288   ;;  %vm319_vm13 = vcmask 900096   ;;  %vm341_vm15 = vcmask 785408   ;;  %vm374_vm0 = vcmask 769024  }
  0x8d   : > { %v360_v46 = vsel %vm359_vm3, %v358_v38, %v357_v33  ;;  %vm871_vm9 = vcmp.ne.s16.totalorder %v358_v38, 0  ;;  %vm581_vm2 = vcmask 15368   ;;  %vm604_vm3 = vcmask 23568  }
  0x8e   : > { %v223_v41 = vpop.permute.xlu0 %222  ;;  %vm361_vm10 = vcmp.ne.s16.totalorder %v360_v46, 0  ;;  %v364_v53 = vsel %vm871_vm9, %v838_v17, 0  ;;  %v291_v60 = vpop.permute.xlu1 %290  ;;  %v757_v46 = vld [vmem:[%s967_s1] sm:$0xff]  }
  0x8f   : > { %314 = vrot.lane.b32.xlu0 %v309_v36, %s778_s9  ;;  %v225_v43 = vrot.slane %v223_v41, 4  ;;  %v363_v54 = vsel %vm361_vm10, %v834_v16, 0  ;;  %v294_v5 = vrot.slane %v291_v60, 4 }
  0x90   : > { %312 = vrot.lane.b32.xlu1 %v308_v42, %s778_s9 }
  0x91   : > { %v227_v48 = vsel %vm226_vm4, %v224_v40, %v225_v43 }
  0x92   : > { %v229_v49 = vsel %vm228_vm5, %v221_v34, %v227_v48  ;;  %v293_v59 = vpop.permute.xlu0 %292  ;;  %v346_v62 = vpop.permute.xlu1 %345  ;;  %vm648_vm5 = vcmask 16384  }
  0x93   : > { %336 = vrot.lane.b32.xlu0 %v331_v44, %s779_s10  ;;  %v707_v51 = vcombine.high %v216_v45, %v229_v49  ;;  %v706_v52 = vcombine.low %v216_v45, %v229_v49  ;;  %v295_v4 = vrot.slane %v293_v59, 4  ;;  %v349_v10 = vrot.slane %v346_v62, 4 }
  0x94   : > { %334 = vrot.lane.b32.xlu1 %v330_v50, %s779_s10 }
  0x95   : > { %488 = vmatprep.subr.bf16.mxu0 %v707_v51  ;;  %721 = vmatprep.subr.bf16.mxu1 %v707_v51  ;;  %v296_v13 = vsel %vm226_vm4, %v294_v5, %v295_v4 }
  0x96   : > { %489 = vmatpush1.bf16.msra.mxu0 %v706_v52  ;;  %726 = vmatpush1.bf16.msra.mxu1 %v706_v52  ;;  %v348_v61 = vpop.permute.xlu0 %347  ;;  %v298_v24 = vsel %vm297_vm12, %v291_v60, %v296_v13 }
  0x97   : > { %369 = vrot.lane.b32.xlu0 %v364_v53, %s780_s11  ;;  %v350_v18 = vrot.slane %v348_v61, 4 }
  0x98   : > { %367 = vrot.lane.b32.xlu1 %v363_v54, %s780_s11 }
  0x99   : > { %v351_v28 = vsel %vm226_vm4, %v349_v10, %v350_v18 }
  0x9a   : > { %v353_v34 = vsel %vm352_vm14, %v346_v62, %v351_v28 }
  0x9b   : > { %406 = vperm.xlu0 %756, %v884_v55  }
  0x9c   : > { %401 = vperm.xlu1 %755, %v889_v56  }
  0xa0   : > { %411 = vperm.xlu1 %755, %v896_v57  }
  0xa4   : > { %416 = vperm.xlu1 %755, %v902_v58  }
  0xf9   : > { %v259_v63 = vpop.permute.xlu0 %258 }
  0xfa   : > { %v257_v0 = vpop.permute.xlu1 %256  ;;  %v261_v1 = vrot.slane %v259_v63, 4 }
  0xfb   : > { %v260_v2 = vrot.slane %v257_v0, 4 }
  0xfd   : > { %v282_v3 = vpop.permute.xlu0 %281  ;;  %v262_v8 = vsel %vm226_vm4, %v260_v2, %v261_v1 }
  0xfe   : > { %v284_v6 = vrot.slane %v282_v3, 4  ;;  %v280_v7 = vpop.permute.xlu1 %279  ;;  %v264_v14 = vsel %vm263_vm7, %v257_v0, %v262_v8 }
  0xff   : > { %v283_v9 = vrot.slane %v280_v7, 4 }
 0x101   : > { %v285_v11 = vsel %vm226_vm4, %v283_v9, %v284_v6  ;;  %v315_v12 = vpop.permute.xlu0 %314 }
 0x102   : > { %v287_v15 = vsel %vm286_vm11, %v280_v7, %v285_v11  ;;  %v317_v16 = vrot.slane %v315_v12, 4  ;;  %v313_v17 = vpop.permute.xlu1 %312 }
 0x103   : > { %v708_v19 = vcombine.low %v264_v14, %v287_v15  ;;  %v709_v20 = vcombine.high %v264_v14, %v287_v15  ;;  %v316_v21 = vrot.slane %v313_v17, 4 }
 0x105   : > { %v318_v22 = vsel %vm226_vm4, %v316_v21, %v317_v16  ;;  %v337_v23 = vpop.permute.xlu0 %336  ;;  %490 = vmatprep.subr.bf16.mxu0 %v709_v20  ;;  %722 = vmatprep.subr.bf16.mxu1 %v709_v20 }
 0x106   : > { %v320_v25 = vsel %vm319_vm13, %v313_v17, %v318_v22  ;;  %v339_v26 = vrot.slane %v337_v23, 4  ;;  %v335_v27 = vpop.permute.xlu1 %334  ;;  %491 = vmatpush1.bf16.msra.mxu0 %v708_v19  ;;  %727 = vmatpush1.bf16.msra.mxu1 %v708_v19 }
 0x107   : > { %v710_v29 = vcombine.low %v298_v24, %v320_v25  ;;  %v711_v30 = vcombine.high %v298_v24, %v320_v25  ;;  %v338_v31 = vrot.slane %v335_v27, 4  ;;  %v395_v24 = vld [vmem:[%s969_s3] sm:$0x1]  ;;  %v396_v25 = vld [vmem:[%s969_s3 + $0x1] sm:$0x1] }
 0x109   : > { %v340_v32 = vsel %vm226_vm4, %v338_v31, %v339_v26  ;;  %v370_v33 = vpop.permute.xlu0 %369  ;;  %492 = vmatprep.subr.bf16.mxu0 %v711_v30  ;;  %723 = vmatprep.subr.bf16.mxu1 %v711_v30 }
 0x10a   : > { %v342_v35 = vsel %vm341_vm15, %v335_v27, %v340_v32  ;;  %v372_v36 = vrot.slane %v370_v33, 4  ;;  %v368_v37 = vpop.permute.xlu1 %367  ;;  %493 = vmatpush1.bf16.msra.mxu0 %v710_v29  ;;  %728 = vmatpush1.bf16.msra.mxu1 %v710_v29 }
 0x10b   : > { %v712_v38 = vcombine.low %v342_v35, %v353_v34  ;;  %v713_v39 = vcombine.high %v342_v35, %v353_v34  ;;  %v371_v40 = vrot.slane %v368_v37, 4 }
 0x10d   : > { %v373_v41 = vsel %vm226_vm4, %v371_v40, %v372_v36  ;;  %494 = vmatprep.subr.bf16.mxu0 %v713_v39  ;;  %724 = vmatprep.subr.bf16.mxu1 %v713_v39 }
 0x10e   : > { %v375_v42 = vsel %vm374_vm0, %v368_v37, %v373_v41  ;;  %495 = vmatpush1.bf16.msra.mxu0 %v712_v38  ;;  %729 = vmatpush1.bf16.msra.mxu1 %v712_v38 }
 0x10f   : > { %v714_v43 = vcombine.low %v375_v42, %v375_v42  ;;  %v715_v44 = vcombine.high %v375_v42, %v375_v42 }
 0x111   : > { %716 = vmatprep.subr.msk.bf16.mxu0 %vm226_vm4, %v715_v44  ;;  %725 = vmatprep.subr.msk.bf16.mxu1 %vm226_vm4, %v715_v44  ;;  %v483_v45 = vsel %vm226_vm4, %v714_v43, 0  ;;  %vm644_vm4 = vcmask 7168  }
 0x112   : > { %497 = vmatpush1.bf16.msra.mxu0 %v483_v45  ;;  %730 = vmatpush1.bf16.msra.mxu1 %v483_v45 }
 0x115   : > { %717 = vmatmul.mubr.msk.bf16.vlgmr.msra.gmra.mrb[0].mxu0 %vm474_vm1, %v757_v46  ;;  %718 = vmatmul.mubr.msk.bf16.vlgmr.msra.gmra.mrb[0].mxu1 %vm474_vm1, %v758_v47 }
 0x11a   : > { %v407_v51 = vpop.permute.xlu0 %406 }
 0x11b   : > { %v402_v48 = vpop.permute.xlu1 %401 }
 0x11f   : > { %v412_v49 = vpop.permute.xlu1 %411 }
 0x123   : > { %v417_v50 = vpop.permute.xlu1 %416 }
 0x1e8   : > { %v522_v52 = vpop.f32.mrb[0].mxu0  ;;  %v532_v53 = vpop.f32.mrb[0].mxu1 }
 0x1e9   : > { %v523_v54 = vadd.f32 %v522_v52, %v402_v48  ;;  %v533_v59 = vadd.f32 %v532_v53, %v412_v49  ;;  %v524_v60 = vpop.f32.mrb[1].mxu0  ;;  %v534_v61 = vpop.f32.mrb[1].mxu1 }
 0x1ea   : > { %v525_v62 = vadd.f32 %v524_v60, %v402_v48  ;;  %v535_v63 = vadd.f32 %v534_v61, %v412_v49  ;;  %v526_v0 = vpop.f32.mrb[2].mxu0  ;;  %v536_v1 = vpop.f32.mrb[2].mxu1 }
 0x1eb   : > { %v541_v2 = vmax.f32 %v523_v54, 0.0  ;;  %v545_v3 = vmax.f32 %v533_v59, 0.0  ;;  %v527_v4 = vadd.f32 %v526_v0, %v407_v51  ;;  %v537_v5 = vadd.f32 %v536_v1, %v417_v50  ;;  %v528_v6 = vpop.f32.mrb[3].mxu0  ;;  %v538_v7 = vpop.f32.mrb[3].mxu1 }
 0x1ec   : > { %v542_v8 = vmax.f32 %v525_v62, 0.0  ;;  %v546_v9 = vmax.f32 %v535_v63, 0.0  ;;  %v529_v10 = vadd.f32 %v528_v6, %v407_v51  ;;  %v539_v11 = vadd.f32 %v538_v7, %v417_v50 }
 0x1ed   : > { %v543_v12 = vmax.f32 %v527_v4, 0.0  ;;  %v547_v13 = vmax.f32 %v537_v5, 0.0 }
 0x1ee   : > { %v544_v14 = vmax.f32 %v529_v10, 0.0  ;;  %v548_v15 = vmax.f32 %v539_v11, 0.0  ;;  %v571_v16 = vmax.f32 %v545_v3, %v546_v9  ;;  %v549_v17 = vadd.f32 %v542_v8, %v541_v2 }
 0x1ef   : > { %v555_v18 = vadd.f32 %v546_v9, %v545_v3  ;;  %v565_v19 = vmax.f32 %v541_v2, %v542_v8 }
 0x1f0   : > { %572 = vmax.xlane.f32.xlu1 %v571_v16  ;;  %550 = vadd.xlane.f32.xlu0 %v549_v17  ;;  %v552_v20 = vadd.f32 %v544_v14, %v543_v12  ;;  %v568_v21 = vmax.f32 %v543_v12, %v544_v14  ;;  %v558_v22 = vadd.f32 %v548_v15, %v547_v13  ;;  %v398_v14 = vld [vmem:[%s969_s3 + $0x3] sm:$0x1] }
 0x1f1   : > { %v574_v23 = vmax.f32 %v547_v13, %v548_v15  ;;  %v397_v13 = vld [vmem:[%s969_s3 + $0x2] sm:$0x1] }
 0x1f4   : > { %553 = vadd.xlane.f32.xlu1 %v552_v20  ;;  %556 = vadd.xlane.f32.xlu0 %v555_v18 }
 0x1f8   : > { %569 = vmax.xlane.f32.xlu1 %v568_v21  ;;  %566 = vmax.xlane.f32.xlu0 %v565_v19 }
 0x1fc   : > { %559 = vadd.xlane.f32.xlu0 %v558_v22 }
 0x200   : > { %575 = vmax.xlane.f32.xlu0 %v574_v23 }
 0x209   : > { %596 = vrot.lane.b32.xlu1 %v395_v24, %s776_s7 }
 0x216   : > { %619 = vrot.lane.b32.xlu0 %v396_v25, %s773_s30 }
 0x27d   : > { %v573_v26 = vpop.xlane.xlu1 %572  ;;  %v551_v27 = vpop.xlane.xlu0 %550 }
 0x27e   : > { %v561_v28 = vmul.f32 0.00390625, %v551_v27  ;;  %v602_v46 = vmul.f32 %v573_v26, %v896_v57 }
 0x280   : > { %v577_v32 = vmul.f32 %v561_v28, %v889_v56  ;;  %v608_v51 = vsel %vm604_vm3, %v602_v46, 0.0 }
 0x281   : > { %v554_v29 = vpop.xlane.xlu1 %553  ;;  %v557_v30 = vpop.xlane.xlu0 %556 }
 0x282   : > { %v562_v31 = vmul.f32 0.00390625, %v554_v29  ;;  %v563_v34 = vmul.f32 0.00390625, %v557_v30  ;;  %v582_v40 = vsel %vm581_vm2, %v577_v32, 0.0 }
 0x284   : > { %v578_v33 = vmul.f32 %v562_v31, %v884_v55  ;;  %v579_v41 = vmul.f32 %v563_v34, %v896_v57 }
 0x285   : > { %v570_v35 = vpop.xlane.xlu1 %569  ;;  %v567_v36 = vpop.xlane.xlu0 %566 }
 0x286   : > { %v583_v37 = vsel %vm581_vm2, %v578_v33, 0.0  ;;  %v601_v38 = vmul.f32 %v570_v35, %v884_v55  ;;  %v600_v39 = vmul.f32 %v567_v36, %v889_v56  ;;  %v585_v49 = vsel %vm581_vm2, %v579_v41, 0.0 }
 0x287   : > { %v584_v44 = vadd.f32 %v583_v37, %v582_v40 }
 0x288   : > { %v606_v42 = vsel %vm604_vm3, %v601_v38, 0.0  ;;  %v605_v43 = vsel %vm604_vm3, %v600_v39, 0.0 }
 0x289   : > { %v560_v45 = vpop.xlane.xlu0 %559  ;;  %v607_v48 = vadd.f32 %v606_v42, %v605_v43  ;;  %v586_v56 = vadd.f32 %v585_v49, %v584_v44  ;;  %v597_v6 = vpop.permute.xlu1 %596 }
 0x28a   : > { %v564_v47 = vmul.f32 0.00390625, %v560_v45 }
 0x28b   : > { %v609_v59 = vadd.f32 %v608_v51, %v607_v48 }
 0x28c   : > { %v580_v55 = vmul.f32 %v564_v47, %v902_v58 }
 0x28d   : > { %v576_v50 = vpop.xlane.xlu0 %575 }
 0x28e   : > { %v587_v52 = vsel %vm581_vm2, %v580_v55, 0.0  ;;  %v603_v53 = vmul.f32 %v576_v50, %v902_v58 }
 0x28f   : > { %v588_v54 = vadd.f32 %v587_v52, %v586_v56 }
 0x290   : > { %v610_v60 = vsel %vm604_vm3, %v603_v53, 0.0 }
 0x291   : > { %v589_v61 = vrot.slane %v588_v54, 4  ;;  %v611_v57 = vadd.f32 %v610_v60, %v609_v59  ;;  %v620_v58 = vpop.permute.xlu0 %619 }
 0x293   : > { %v612_v62 = vrot.slane %v611_v57, 4  ;;  %v590_v63 = vadd.f32 %v589_v61, %v588_v54 }
 0x295   : > { %v613_v0 = vadd.f32 %v612_v62, %v611_v57  ;;  %v591_v1 = vrot.slane %v590_v63, 2 }
 0x297   : > { %v592_v2 = vadd.f32 %v591_v1, %v590_v63  ;;  %v614_v3 = vrot.slane %v613_v0, 2 }
 0x299   : > { %v593_v4 = vrot.slane %v592_v2, 1  ;;  %v615_v5 = vadd.f32 %v614_v3, %v613_v0 }
 0x29b   : > { %v594_v7 = vadd.f32 %v593_v4, %v592_v2  ;;  %v616_v8 = vrot.slane %v615_v5, 1 }
 0x29d   : > { %v599_v9 = vadd.f32 %v597_v6, %v594_v7  ;;  %v617_v10 = vadd.f32 %v616_v8, %v615_v5 }
 0x29f   : > { %634 = vrot.lane.b32.xlu0 %v599_v9, %s773_s30  ;;  %624 = vrot.lane.b32.xlu1 %v599_v9, %s768_s22  ;;  %v622_v11 = vadd.f32 %v620_v58, %v617_v10 }
 0x2a3   : > { %629 = vrot.lane.b32.xlu1 %v622_v11, %s781_s6 }
 0x2a7   : > { %637 = vrot.lane.b32.xlu1 %v622_v11, %s773_s30 }
 0x311   : > { %v625_v12 = vpop.permute.xlu1 %624  ;;  %v635_v19 = vpop.permute.xlu0 %634 }
 0x312   : > { %v627_v16 = vmul.f32 %v625_v12, %v397_v13 }
 0x315   : > { %v630_v15 = vpop.permute.xlu1 %629 }
 0x316   : > { %v632_v17 = vmul.f32 %v630_v15, %v398_v14 }
 0x318   : > { %v633_v18 = vadd.f32 %v632_v17, %v627_v16 }
 0x319   : > { %v638_v20 = vpop.permute.xlu1 %637 }
 0x31a   : > { %641 = vrot.lane.b32.xlu0 %v633_v18, %s773_s30  ;;  %v645_v21 = vsel %vm644_vm4, %v635_v19, %v638_v20 }
 0x38c   : > { %v642_v22 = vpop.permute.xlu0 %641 }
 0x38d   : > { %v647_v23 = vsel %vm248_vm8, %v645_v21, %v642_v22 }
 0x38e   : > { %649 = vst.msk [vmem:[%s193_s12] sm:$0x1] %vm648_vm5, %v647_v23 }
 0x38f PF: > { %s14_s15 = sadd.s32 1, %s765_s15  }
 0x390   : > { %p11_p4 = scmp.ge.s32.totalorder %s14_s15, 4  }
 0x392   :  { %13 = sbr.rel (!%p11_p4) target bundleno = 1 (0x1), region = 67 }

</bundles_post_ra>
